<compile_context>
chip_gen: v5e
topology: v5e:2x2
jax: 0.10.0
libtpu: 0.0.40
codegen_flags: <defaults>
</compile_context>

<pallas_src>
import numpy as np
import jax
import jax.numpy as jnp
from jax.experimental import pallas as pl
from jax.experimental.pallas import tpu as pltpu


def _round_up(x, m):
    return ((x + m - 1) // m) * m


# ----------------------------------------------------------------------------
# Fused kernel: patch-embed encoder + Adapter + residual blend + L2 norm + logits.
# Per grid step (one batch tile of TB rows):
#   patches_ref : (TB, P, F)  bf16
#   w_embed_ref : (F, Dp)     bf16   (patch-embed weight, 1/P baked in, zero-padded to Dp)
#   w1_ref      : (Dp, Drp)   f32    (adapter fc1.weight.T, zero-padded)
#   w2_ref      : (Drp, Dp)   f32    (adapter fc2.weight.T, zero-padded)
#   wcls_ref    : (Dp, Cp)    f32    (= exp(logit_scale) * normalize(text).T, zero-padded)
#   logits_ref  : (TB, Cp)    f32
# ----------------------------------------------------------------------------
def clip_fused_kernel(patches_ref, w_embed_ref, w1_ref, w2_ref, wcls_ref, logits_ref):
    # Synthetic image encoder: mean-pool over patches (VPU reduce), then one bf16 GEMM (MXU).
    # mean_p(x[b,p] @ W) == (mean_p x[b,p]) @ W  (exact: the encoder is linear in patches);
    # the 1/P factor is baked into w_embed in the wrapper.
    pooled = jnp.sum(patches_ref[...].astype(jnp.float32), axis=1)         # (TB, F) f32
    f = jnp.dot(pooled.astype(jnp.bfloat16), w_embed_ref[...],
                preferred_element_type=jnp.float32)                        # (TB, Dp) f32

    # Adapter: Linear(no bias) -> ReLU -> Linear(no bias) -> ReLU  (tiny, keep f32)
    h = jnp.maximum(jnp.dot(f, w1_ref[...], preferred_element_type=jnp.float32), 0.0)
    h = jnp.maximum(jnp.dot(h, w2_ref[...], preferred_element_type=jnp.float32), 0.0)

    # Residual blend, ratio = 0.2:  0.2*h + 0.8*f  ==  f + 0.2*(h - f)
    blended = f + 0.2 * (h - f)

    # L2 normalize image features along last dim (padded cols are exactly zero, so the
    # sum over Dp equals the sum over D). rsqrt -> EUP slot (free vs VALU divide).
    ss = jnp.sum(blended * blended, axis=-1, keepdims=True)
    img = blended * jax.lax.rsqrt(ss)

    # logits = exp(logit_scale) * img @ t_norm.T; classifier is pre-scaled/pre-transposed,
    # lane-dense (Cp multiple of 128) so the store is an unmasked full-lane vst.
    logits_ref[...] = jnp.dot(img, wcls_ref[...],
                              preferred_element_type=jnp.float32).astype(logits_ref.dtype)


# ----------------------------------------------------------------------------
# Full forward (test=False path)
# ----------------------------------------------------------------------------
def clip_forward(image, params):
    p = params["patch_size"]
    B, Cch, H, W = image.shape
    Hp, Wp = H // p, W // p
    P = Hp * Wp
    F_dim = Cch * p * p

    # Glue: NCHW -> (B, P, C*p*p) patch extraction; cast to bf16 (halves DMA bytes for the
    # only large array).
    x = image.reshape(B, Cch, Hp, p, Wp, p)
    x = jnp.transpose(x, (0, 2, 4, 1, 3, 5)).reshape(B, P, F_dim)
    patches = x.astype(jnp.bfloat16)

    D = params["patch_weight"].shape[1]
    Dr = params["adapter_w1"].shape[1]
    C = params["text_features"].shape[0]
    Dp = _round_up(D, 128)
    Drp = _round_up(Dr, 128)
    Cp = _round_up(C, 128)

    # Constant preprocessing (done once, hoisted out of the per-step body):
    #   * bake 1/P mean-pool scale into the patch-embed weight (exact, linear)
    #   * zero-pad every weight to lane-dense multiples of 128 (exact through ReLU / norms)
    #   * normalize text features, fold in exp(logit_scale), pre-transpose to (D, C)
    w_embed = jnp.zeros((F_dim, Dp), jnp.bfloat16).at[:, :D].set(
        (params["patch_weight"] * (1.0 / P)).astype(jnp.bfloat16))
    w1 = jnp.zeros((Dp, Drp), jnp.float32).at[:D, :Dr].set(params["adapter_w1"])
    w2 = jnp.zeros((Drp, Dp), jnp.float32).at[:Dr, :D].set(params["adapter_w2"])
    t = params["text_features"]
    t = t * jax.lax.rsqrt(jnp.sum(t * t, axis=-1, keepdims=True))
    wcls = jnp.zeros((Dp, Cp), jnp.float32).at[:D, :C].set(
        (jnp.exp(params["logit_scale"][0, 0]) * t).T)

    # Batch tiling: TB rows per grid step (second-to-last dim of the output block -> mult. of 8).
    TB = 8 if B % 8 == 0 else B
    assert B % TB == 0
    grid = (B // TB,)

    logits_padded = pl.pallas_call(
        clip_fused_kernel,
        out_shape=jax.ShapeDtypeStruct((B, Cp), jnp.float32),
        grid_spec=pltpu.PrefetchScalarGridSpec(
            num_scalar_prefetch=0,
            grid=grid,
            in_specs=[
                pl.BlockSpec((TB, P, F_dim), lambda i: (i, 0, 0)),  # patches: tiled over B
                pl.BlockSpec((F_dim, Dp), lambda i: (0, 0)),        # weights: resident
                pl.BlockSpec((Dp, Drp), lambda i: (0, 0)),
                pl.BlockSpec((Drp, Dp), lambda i: (0, 0)),
                pl.BlockSpec((Dp, Cp), lambda i: (0, 0)),
            ],
            out_specs=pl.BlockSpec((TB, Cp), lambda i: (i, 0)),
        ),
        compiler_params=pltpu.CompilerParams(
            dimension_semantics=("parallel",)),
    )(patches, w_embed, w1, w2, wcls)

    return logits_padded[:, :C]


if __name__ == "__main__":
    # Small, forward-consistent shapes
    B, C_in, H, W = 16, 3, 16, 16      # image, NCHW
    patch = 8                          # -> P = 4 patches, F = C_in*patch*patch = 192
    ctx_dim = 32                       # feature dim D (ln_final width stand-in)
    reduction = 4                      # Adapter hidden = ctx_dim // 4 = 8
    n_class = 5

    key = jax.random.PRNGKey(0)
    k_img, k_pw, k_w1, k_w2, k_txt = jax.random.split(key, 5)

    image = jax.random.normal(k_img, (B, C_in, H, W), dtype=jnp.float32)

    F_dim = C_in * patch * patch
    params = {
        "patch_size": patch,
        # synthetic patch-embedding weight (F, D)
        "patch_weight": jax.random.normal(k_pw, (F_dim, ctx_dim), jnp.float32) * 0.05,
        # Adapter weights stored transposed for x @ W form:
        #   fc1: Linear(ctx_dim, ctx_dim//4, bias=False)  -> W1: (D, D//4)
        #   fc2: Linear(ctx_dim//4, ctx_dim, bias=False)  -> W2: (D//4, D)
        "adapter_w1": jax.random.normal(k_w1, (ctx_dim, ctx_dim // reduction), jnp.float32) * 0.1,
        "adapter_w2": jax.random.normal(k_w2, (ctx_dim // reduction, ctx_dim), jnp.float32) * 0.1,
        # synthetic pre-encoded per-class text features (n_class, D)
        "text_features": jax.random.normal(k_txt, (n_class, ctx_dim), jnp.float32),
        # CLIP's learned logit scale init: log(1/0.07)
        "logit_scale": jnp.full((1, 1), np.log(1.0 / 0.07), dtype=jnp.float32),
    }

    logits = jax.block_until_ready(clip_forward(image, params))

    # Reference mirrors the kernel's deliberate precision choice (bf16 patch-embed GEMM with
    # f32 accumulation — the original PyTorch module also runs in clip_model.dtype, i.e. fp16);
    # everything else is plain f32 math matching the module.
    def ref_forward(image, params):
        p = params["patch_size"]
        Bsz, Cch, Hh, Ww = image.shape
        Pn = (Hh // p) * (Ww // p)
        x = image.reshape(Bsz, Cch, Hh // p, p, Ww // p, p)
        x = jnp.transpose(x, (0, 2, 4, 1, 3, 5)).reshape(Bsz, Pn, Cch * p * p)
        xq = x.astype(jnp.bfloat16).astype(jnp.float32)
        wq = (params["patch_weight"] * (1.0 / Pn)).astype(jnp.bfloat16)
        pooled = jnp.sum(xq, axis=1).astype(jnp.bfloat16)
        f = jnp.dot(pooled, wq, preferred_element_type=jnp.float32)
        h = jnp.maximum(f @ params["adapter_w1"], 0.0)
        h = jnp.maximum(h @ params["adapter_w2"], 0.0)
        blended = 0.2 * h + 0.8 * f
        img = blended / jnp.linalg.norm(blended, axis=-1, keepdims=True)
        t = params["text_features"]
        t = t / jnp.linalg.norm(t, axis=-1, keepdims=True)
        return jnp.exp(params["logit_scale"][0, 0]) * img @ t.T

    ref = ref_forward(image, params)
    assert logits.shape == (B, n_class)
    np.testing.assert_allclose(np.asarray(logits), np.asarray(ref), rtol=1e-2, atol=1e-2)
    print("KERNEL_OK")
</pallas_src>

<mosaic_0001>
module attributes {stable_mosaic.version = 11 : i64} {
  func.func @clip_fused_kernel(%arg0: i32, %arg1: memref<8x4x192xbf16, #tpu.memory_space<vmem>>, %arg2: memref<192x128xbf16, #tpu.memory_space<vmem>>, %arg3: memref<128x128xf32, #tpu.memory_space<vmem>>, %arg4: memref<128x128xf32, #tpu.memory_space<vmem>>, %arg5: memref<128x128xf32, #tpu.memory_space<vmem>>, %arg6: memref<8x128xf32, #tpu.memory_space<vmem>>) attributes {dimension_semantics = [#tpu.dimension_semantics<parallel>], iteration_bounds = array<i64: 2>, scalar_prefetch = 0 : i64, scratch_operands = 0 : i64, tpu.core_type = #tpu.core_type<tc>, window_params = [{transform_indices = @transform_0, window_bounds = array<i64: 8, 4, 192>}, {pipeline_mode = #tpu.pipeline_mode<synchronous>, transform_indices = @transform_1, window_bounds = array<i64: 192, 128>}, {pipeline_mode = #tpu.pipeline_mode<synchronous>, transform_indices = @transform_2, window_bounds = array<i64: 128, 128>}, {pipeline_mode = #tpu.pipeline_mode<synchronous>, transform_indices = @transform_3, window_bounds = array<i64: 128, 128>}, {pipeline_mode = #tpu.pipeline_mode<synchronous>, transform_indices = @transform_4, window_bounds = array<i64: 128, 128>}, {transform_indices = @transform_5, window_bounds = array<i64: 8, 128>}]} {
    %c0 = arith.constant 0 : index
    %c0_0 = arith.constant 0 : index
    %c0_1 = arith.constant 0 : index
    %0 = vector.load %arg1[%c0, %c0_0, %c0_1] : memref<8x4x192xbf16, #tpu.memory_space<vmem>>, vector<8x4x192xbf16>
    %1 = arith.extf %0 : vector<8x4x192xbf16> to vector<8x4x192xf32>
    %cst = arith.constant dense<0.000000e+00> : vector<8x192xf32>
    %2 = vector.multi_reduction <add>, %1, %cst [1] : vector<8x4x192xf32> to vector<8x192xf32>
    %3 = arith.truncf %2 : vector<8x192xf32> to vector<8x192xbf16>
    %c0_2 = arith.constant 0 : index
    %c0_3 = arith.constant 0 : index
    %4 = vector.load %arg2[%c0_2, %c0_3] : memref<192x128xbf16, #tpu.memory_space<vmem>>, vector<192x128xbf16>
    %cst_4 = arith.constant dense<0.000000e+00> : vector<8x128xf32>
    %5 = tpu.matmul %3, %4, %cst_4 {dimension_numbers = #tpu.dot_dimension_numbers<[1], [0], [0], [1], [0, 0, 1, 1], [], []>} : vector<8x192xbf16>, vector<192x128xbf16>, vector<8x128xf32> -> vector<8x128xf32>
    %c0_5 = arith.constant 0 : index
    %c0_6 = arith.constant 0 : index
    %6 = vector.load %arg3[%c0_5, %c0_6] : memref<128x128xf32, #tpu.memory_space<vmem>>, vector<128x128xf32>
    %cst_7 = arith.constant dense<0.000000e+00> : vector<8x128xf32>
    %7 = tpu.matmul %5, %6, %cst_7 {dimension_numbers = #tpu.dot_dimension_numbers<[1], [0], [0], [1], [0, 0, 1, 1], [], []>} : vector<8x128xf32>, vector<128x128xf32>, vector<8x128xf32> -> vector<8x128xf32>
    %cst_8 = arith.constant 0.000000e+00 : f32
    %8 = vector.broadcast %cst_8 : f32 to vector<8x128xf32>
    %9 = arith.maximumf %7, %8 : vector<8x128xf32>
    %c0_9 = arith.constant 0 : index
    %c0_10 = arith.constant 0 : index
    %10 = vector.load %arg4[%c0_9, %c0_10] : memref<128x128xf32, #tpu.memory_space<vmem>>, vector<128x128xf32>
    %cst_11 = arith.constant dense<0.000000e+00> : vector<8x128xf32>
    %11 = tpu.matmul %9, %10, %cst_11 {dimension_numbers = #tpu.dot_dimension_numbers<[1], [0], [0], [1], [0, 0, 1, 1], [], []>} : vector<8x128xf32>, vector<128x128xf32>, vector<8x128xf32> -> vector<8x128xf32>
    %cst_12 = arith.constant 0.000000e+00 : f32
    %12 = vector.broadcast %cst_12 : f32 to vector<8x128xf32>
    %13 = arith.maximumf %11, %12 : vector<8x128xf32>
    %14 = arith.subf %13, %5 : vector<8x128xf32>
    %cst_13 = arith.constant 2.000000e-01 : f32
    %15 = vector.broadcast %cst_13 : f32 to vector<8x128xf32>
    %16 = arith.mulf %15, %14 : vector<8x128xf32>
    %17 = arith.addf %5, %16 : vector<8x128xf32>
    %18 = arith.mulf %17, %17 : vector<8x128xf32>
    %cst_14 = arith.constant dense<0.000000e+00> : vector<8xf32>
    %19 = vector.multi_reduction <add>, %18, %cst_14 [1] : vector<8x128xf32> to vector<8xf32>
    %20 = vector.shape_cast %19 : vector<8xf32> to vector<8x1xf32>
    %21 = math.rsqrt %20 : vector<8x1xf32>
    %22 = vector.broadcast %21 : vector<8x1xf32> to vector<8x128xf32>
    %23 = arith.mulf %17, %22 : vector<8x128xf32>
    %c0_15 = arith.constant 0 : index
    %c0_16 = arith.constant 0 : index
    %24 = vector.load %arg5[%c0_15, %c0_16] : memref<128x128xf32, #tpu.memory_space<vmem>>, vector<128x128xf32>
    %cst_17 = arith.constant dense<0.000000e+00> : vector<8x128xf32>
    %25 = tpu.matmul %23, %24, %cst_17 {dimension_numbers = #tpu.dot_dimension_numbers<[1], [0], [0], [1], [0, 0, 1, 1], [], []>} : vector<8x128xf32>, vector<128x128xf32>, vector<8x128xf32> -> vector<8x128xf32>
    %c0_18 = arith.constant 0 : index
    %c0_19 = arith.constant 0 : index
    %26 = vector.load %arg6[%c0_18, %c0_19] : memref<8x128xf32, #tpu.memory_space<vmem>>, vector<8x128xf32>
    tpu.vector_store %arg6[%c0_18, %c0_19], %25 {strides = array<i32>} : memref<8x128xf32, #tpu.memory_space<vmem>>, vector<8x128xf32>,
    return
  }
  func.func @transform_0(%arg0: i32) -> (i32, i32, i32) {
    %c0_i32 = arith.constant 0 : i32
    %c0_i32_0 = arith.constant 0 : i32
    %c0_i32_1 = arith.constant 0 : i32
    return %arg0, %c0_i32, %c0_i32_0 : i32, i32, i32
  }
  func.func @transform_1(%arg0: i32) -> (i32, i32) {
    %c0_i32 = arith.constant 0 : i32
    %c0_i32_0 = arith.constant 0 : i32
    %c0_i32_1 = arith.constant 0 : i32
    return %c0_i32, %c0_i32_0 : i32, i32
  }
  func.func @transform_2(%arg0: i32) -> (i32, i32) {
    %c0_i32 = arith.constant 0 : i32
    %c0_i32_0 = arith.constant 0 : i32
    %c0_i32_1 = arith.constant 0 : i32
    return %c0_i32, %c0_i32_0 : i32, i32
  }
  func.func @transform_3(%arg0: i32) -> (i32, i32) {
    %c0_i32 = arith.constant 0 : i32
    %c0_i32_0 = arith.constant 0 : i32
    %c0_i32_1 = arith.constant 0 : i32
    return %c0_i32, %c0_i32_0 : i32, i32
  }
  func.func @transform_4(%arg0: i32) -> (i32, i32) {
    %c0_i32 = arith.constant 0 : i32
    %c0_i32_0 = arith.constant 0 : i32
    %c0_i32_1 = arith.constant 0 : i32
    return %c0_i32, %c0_i32_0 : i32, i32
  }
  func.func @transform_5(%arg0: i32) -> (i32, i32) {
    %c0_i32 = arith.constant 0 : i32
    %c0_i32_0 = arith.constant 0 : i32
    return %arg0, %c0_i32 : i32, i32
  }
}

</mosaic_0001>

<bundles_post_ra>
// kernel: tpu_custom_call.1
= control target key start
LH: loop header
LB: loop body
LE: loop exit
PB: predicated region body
PF: predicated region fallthrough
CT: control target
= control target key end

     0   :  { %10 = vsyncpa [#allocation3], 0  ;;  %s1624_s0 = inlined_call_operand.hbm [shape: bf16[16,4,192], index: 0, kind: input, shape index: {}]   ;;  %s1625_s1 = inlined_call_operand.hbm [shape: bf16[192,128], index: 1, kind: input, shape index: {}]   ;;  %s1626_s2 = inlined_call_operand.hbm [shape: f32[128,128], index: 2, kind: input, shape index: {}]   ;;  %s1627_s3 = inlined_call_operand.hbm [shape: f32[128,128], index: 3, kind: input, shape index: {}]   ;;  %s1628_s4 = inlined_call_operand.hbm [shape: f32[128,128], index: 4, kind: input, shape index: {}]   ;;  %s1629_s5 = inlined_call_operand.hbm [shape: f32[16,128], index: 5, kind: output, shape index: {}]  }
   0x1   :  { %12 = vsyncpa [#allocation3 + $0x1], 0 }
   0x2   :  { %13 = vsyncpa [#allocation6], 0 }
   0x3   :  { %14 = vsyncpa [#allocation9], 0 }
   0x4   :  { %15 = vsyncpa [#allocation4], 0 }
   0x5   :  { %17 = vsyncpa [#allocation4 + $0x1], 0  ;;  %s1406_s18 = smov 0   ;;  %s1408_s19 = smov 0  }
   0x6   :  { %s1410_s20 = smov 0   ;;  %s1412_s21 = smov 0  }
   0x7 LB: > { %s1427_s22 = sadd.s32 4294967295, %s1366_s21   ;;  %s945_s23 = sadd.s32 4294967294, %s1366_s21   ;;  %s1366_s21 = sphi %s1412_s21, %s1642_s21   ;;  %s1362_s20 = sphi %s1410_s20, %s1641_s20   ;;  %s1358_s19 = sphi %s1408_s19, %s1640_s19   ;;  %s1354_s18 = sphi %s1406_s18, %s1639_s18  }
   0x8   : > { %p43_p0 = scmp.ne.s32.totalorder %s1358_s19, %s1354_s18  ;;  %p44_p1 = scmp.eq.s32.totalorder %s1427_s22, 0 }
   0x9   : > { %p151_p2 = scmp.eq.s32.totalorder %s1427_s22, 1  ;;  %p157_p3 = scmp.eq.s32.totalorder %s945_s23, 1 }
   0xa   : > { %p1436_p4 = por %p44_p1, %p43_p0  ;;  %p946_p5 = scmp.ge.s32.totalorder %s1366_s21, 1 }
   0xb   : > { %p1441_p6 = por %p157_p3, %p43_p0  ;;  %p164_p7 = scmp.lt.s32.totalorder %s1366_s21, 3 }
   0xc   : > { %s175_s28 = sshll.u32 %s1625_s1, 4  ;;  %s1368_s30 = smov [#allocation5]   ;;  %s176_s28 = int_to_ptr.hbm [resolvable:$true] %s175_s28 }
   0xd   : > { %p1449_p8 = pnand %p946_p5, %p164_p7  ;;  %s177_s6 = sshll.u32 %s1368_s30, 4  ;;  %s178_s6 = int_to_ptr.vmem [resolvable:$true] %s177_s6 }
   0xe   : > { %s203_s10 = sshll.u32 %s1627_s3, 4  ;;  %s1630_s11 = smov 64   ;;  %s204_s10 = int_to_ptr.hbm [resolvable:$true] %s203_s10 }
   0xf   : > { %p1069_p9 = pneg %p1449_p8  ;;  %s1370_s12 = smov 4  }
  0x10   : > { %s1371_s13 = smov [#allocation8]   ;;  %s189_s17 = sshll.u32 %s1626_s2, 4  ;;  %s190_s17 = int_to_ptr.hbm [resolvable:$true] %s189_s17 }
  0x11   : > { %p1457_p10 = pnand %p1069_p9, %p44_p1  ;;  %s205_s14 = sshll.u32 %s1371_s13, 4  ;;  %s206_s14 = int_to_ptr.vmem [resolvable:$true] %s205_s14 }
  0x12   : > { %s1372_s23 = smov 128   ;;  %s1373_s26 = smov 8  }
  0x13   : > { %1072 = dma.hbm_to_vmem [thread:$0]  (!%p1457_p10), %s176_s28, 1536, %s178_s6, [#allocation6], %s1630_s11, %s1630_s11, %s1370_s12  }
  0x14   : > { %1078 = dma.hbm_to_vmem [thread:$0]  (!%p1457_p10), %s204_s10, 2048, %s206_s14, [#allocation9], %s1372_s23, %s1372_s23, %s1373_s26  }
  0x15   : > { %s217_s30 = sshll.u32 %s1628_s4, 4  ;;  %s1374_s6 = smov [#allocation7]   ;;  %s218_s30 = int_to_ptr.hbm [resolvable:$true] %s217_s30 }
  0x16   : > { %s191_s8 = sshll.u32 %s1374_s6, 4  ;;  %s1375_s9 = smov [#allocation10]   ;;  %s192_s8 = int_to_ptr.vmem [resolvable:$true] %s191_s8 }
  0x17   : > { %1075 = dma.hbm_to_vmem [thread:$0]  (!%p1457_p10), %s190_s17, 2048, %s192_s8, [#allocation6], %s1372_s23, %s1372_s23, %s1373_s26  }
  0x18   : > { %s219_s13 = sshll.u32 %s1375_s9, 4  ;;  %s1483_s10 = sadd.s32 1, %s1366_s21   ;;  %s220_s13 = int_to_ptr.vmem [resolvable:$true] %s219_s13 }
  0x19   : > { %1081 = dma.hbm_to_vmem [thread:$0]  (!%p1457_p10), %s218_s30, 2048, %s220_s13, [#allocation9], %s1372_s23, %s1372_s23, %s1373_s26  }
  0x1a   : > { %s30_s14 = sadd.s32 1, %s1362_s20  ;;  %s27_s15 = ssub.s32 %s1366_s21, %s1483_s10 }
  0x1b   : > { %p37_p12 = scmp.ne.s32.totalorder %s1362_s20, %s1358_s19  ;;  %p28_p13 = scmp.eq.s32.totalorder %s27_s15, 0 }
  0x1c   : > { %p38_p0 = scmp.eq.s32.totalorder %s1366_s21, 0  ;;  %p1094_p5 = scmp.lt.s32.totalorder %s1366_s21, 2 }
  0x1d   : > { %p1493_p3 = por %p151_p2, %p37_p12  ;;  %s233_s27 = sand.u32 1, %s1362_s20  }
  0x1e   : > { %s1499_s17 = scalar_select %p28_p13, %s1362_s20, %s30_s14  }
  0x1f   : > { %p39_p7 = por %p38_p0, %p37_p12  ;;  %s952_s7 = sshll.u32 %s233_s27, 5 }
  0x20   : > { %s1017_s23 = sshll.u32 %s1366_s21, 5  ;;  %s237_s6 = scalar_lea.vmem [#allocation2], %s952_s7 }
  0x21   : > { %s243_s30 = scalar_lea.hbm %s1624_s0, %s1017_s23  ;;  %s246_s8 = sshll.u32 %s237_s6, 4  ;;  %s247_s8 = int_to_ptr.vmem [resolvable:$true] %s246_s8 }
  0x22   : > { %s244_s9 = sshll.u32 %s243_s30, 4  ;;  %p1506_p2 = pnand %p1094_p5, %p39_p7  ;;  %s245_s9 = int_to_ptr.hbm [resolvable:$true] %s244_s9 }
  0x23   : > { %s234_s14 = scalar_lea.sflag [#allocation3], %s233_s27  ;;  %s1262_s15 = sshra.s32 %s245_s9, 4  ;;  %s1263_s15 = int_to_ptr.hbm [resolvable:$true] %s1262_s15 }
  0x24   : > { %s1264_s11 = scalar_lea.hbm %s1263_s15, 32  ;;  %p1266_p10 = pneg %p1506_p2 }
  0x25   : > { %p1265_p9 = scmp.ne.s32.totalorder %s1263_s15, %s1264_s11  ;;  %s1269_s26 = scalar_lea.hbm %s1624_s0, 64 }
  0x26   : > { %p1270_p0 = scmp.lt.s32.totalorder %s1263_s15, %s1624_s0  ;;  %p1271_p5 = scmp.lt.s32.totalorder %s1269_s26, %s1264_s11 }
  0x27   : > { %p1267_p12 = pnand %p1266_p10, %p1265_p9 }
  0x28   : > { %p1272_p7 = por %p1271_p5, %p1270_p0 }
  0x29   : > { %p1268_p13 = pneg %p1267_p12 }
  0x2b   : > { %p1273_p11 = pnand %p1272_p7, %p1268_p13 }
  0x2d   : > { %1276 = shalt.err (!%p1273_p11)
}
  0x2e   : > { %s1637_s27 = smov 64   ;;  %258 = sbr.rel (%p1449_p8) target bundleno = 790 (0x316), region = 40 }
  0x2f   : > { %1085 = dma.hbm_to_vmem [thread:$0]  (!%p1506_p2), %s245_s9, 512, %s247_s8, %s234_s14, %s1637_s27, %s1637_s27, %s1370_s12  }
  0x30   : > { %s1526_s6 = sand.u32 (!%p1449_p8), 1, %s1358_s19  }
  0x31   : > { %s957_s15 = sshll.u32 (!%p1449_p8), %s1526_s6, 5  ;;  %s261_s11 = scalar_lea.sflag (!%p1449_p8), [#allocation3], %s1526_s6 }
  0x32   : > { %s1530_s23 = scalar_lea.vmem (!%p1449_p8), [#allocation2], %s957_s15 }
  0x33   : > { %1337 = dma.done.wait (%p1436_p4), %s261_s11, 512  }
  0x34   : > { %1339 = vsyncadd (%p1436_p4), %s261_s11, 4294966784 }
  0x35   : > { %1341 = dma.done.wait (%p44_p1), [#allocation6], 3584  }
  0x36   : > { %1343 = vsyncadd (%p44_p1), [#allocation6], 4294963712 }
  0x37   : > { %1345 = dma.done.wait (%p44_p1), [#allocation9], 4096  }
  0x38   : > { %1347 = vsyncadd (%p44_p1), [#allocation9], 4294963200  ;;  %v1025_v0 = vld [vmem:[#allocation5 + $0x38] sm:$0xff]  ;;  %v1024_v2 = vld [vmem:[#allocation5 + $0x30] sm:$0xff]  ;;  %vm381_vm0 = vcmask 1043456   ;;  %vm389_vm1 = vcmask 519168  }
  0x39   : > { %v1029_v1 = vld [vmem:[#allocation5 + $0x58] sm:$0xff]  ;;  %667 = vmatpush.bf16.msra.mxu0 %v1025_v0  ;;  %v1028_v3 = vld [vmem:[#allocation5 + $0x50] sm:$0xff]  ;;  %v1031_v4 = vld [vmem:[%s1530_s23] sm:$0xff]   ;;  %vm567_vm2 = vcmask 1041409   ;;  %vm569_vm3 = vcmask 1042434   ;;  %vm571_vm4 = vcmask 1043459  }
  0x3a   : > { %684 = vmatpush.bf16.msra.mxu1 %v1029_v1  ;;  %v1046_v5 = vld [vmem:[%s1530_s23 + $0x8] sm:$0xff]   ;;  %v1032_v6 = vunpack.c.l.bf16 %v1031_v4  ;;  %v1033_v7 = vunpack.c.h.bf16 %v1031_v4  ;;  %v1022_v12 = vld [vmem:[#allocation5 + $0x20] sm:$0xff]  ;;  %v1047_v14 = vld [vmem:[%s1530_s23 + $0x10] sm:$0xff]   ;;  %vm573_vm5 = vcmask 1044484   ;;  %vm575_vm6 = vcmask 1045509   ;;  %s962_s24 = sshll.u32 %s1526_s6, 3 }
  0x3b   : > { %v1036_v8 = vunpack.c.l.bf16 %v1046_v5  ;;  %v1023_v9 = vld [vmem:[#allocation5 + $0x28] sm:$0xff]  ;;  %v1037_v10 = vunpack.c.h.bf16 %v1046_v5  ;;  %v1026_v13 = vld [vmem:[#allocation5 + $0x40] sm:$0xff]  ;;  %v1021_v15 = vld [vmem:[#allocation5 + $0x18] sm:$0xff]  ;;  %v1040_v17 = vunpack.c.l.bf16 %v1047_v14  ;;  %v1041_v20 = vunpack.c.h.bf16 %v1047_v14  ;;  %s1013_s29 = sshll.u32 %s1427_s22, 3  ;;  %s311_s13 = scalar_lea.vmem [#allocation11], %s962_s24 }
  0x3c   : > { %v1027_v11 = vld [vmem:[#allocation5 + $0x48] sm:$0xff]  ;;  %338 = vst [vmem:[#allocation1] ss:$2 sm:$0xff] %v1032_v6  ;;  %v1048_v16 = vld [vmem:[%s1530_s23 + $0x18] sm:$0xff]   ;;  %v1020_v23 = vld [vmem:[#allocation5 + $0x10] sm:$0xff]  ;;  %vm577_vm7 = vcmask 1046534   ;;  %s832_s9 = scalar_lea.hbm %s1629_s5, %s1013_s29 }
  0x3d   : > { %668 = vmatpush.bf16.msra.mxu0 %v1024_v2  ;;  %342 = vst [vmem:[#allocation1 + $0x10] ss:$2 sm:$0xff] %v1033_v7  ;;  %v1044_v24 = vunpack.c.l.bf16 %v1048_v16  ;;  %v1045_v27 = vunpack.c.h.bf16 %v1048_v16  ;;  %v1019_v45 = vld [vmem:[#allocation5 + $0x8] sm:$0xff]  ;;  %v1018_v57 = vld [vmem:[#allocation5] sm:$0xff]  ;;  %vm579_vm8 = vcmask 1047559   ;;  %vm663_vm9 = vcmask 523264  }
  0x3e   : > { %685 = vmatpush.bf16.msra.mxu1 %v1028_v3  ;;  %346 = vst [vmem:[#allocation1 + $0x20] ss:$2 sm:$0xff] %v1036_v8  ;;  %s834_s14 = sshll.u32 %s311_s13, 4  ;;  %s836_s7 = sshll.u32 %s832_s9, 4  ;;  %s835_s14 = int_to_ptr.vmem [resolvable:$true] %s834_s14  ;;  %s837_s7 = int_to_ptr.hbm [resolvable:$true] %s836_s7 }
  0x3f   : > { %350 = vst [vmem:[#allocation1 + $0x30] ss:$2 sm:$0xff] %v1037_v10  ;;  %s822_s26 = scalar_lea.sflag [#allocation4], %s1526_s6  ;;  %s1306_s28 = sshra.s32 %s837_s7, 4  ;;  %s1307_s28 = int_to_ptr.hbm [resolvable:$true] %s1306_s28 }
  0x40   : > { %s1308_s30 = scalar_lea.hbm %s1307_s28, 8  ;;  %s1312_s15 = scalar_lea.hbm %s1629_s5, 16 }
  0x41   : > { %669 = vmatpush.bf16.msra.mxu0 %v1023_v9  ;;  %p1309_p1 = scmp.ne.s32.totalorder %s1307_s28, %s1308_s30  ;;  %p1313_p11 = scmp.lt.s32.totalorder %s1307_s28, %s1629_s5 }
  0x42   : > { %686 = vmatpush.bf16.msra.mxu1 %v1027_v11  ;;  %p1314_p2 = scmp.lt.s32.totalorder %s1312_s15, %s1308_s30 }
  0x43   : > { %v339_v18 = vld.sshfl [vmem:[#allocation1] sm:$0xff pattern:$0x75316420]  ;;  %v340_v19 = vld.sshfl [vmem:[#allocation1 + $0x8] sm:$0xff pattern:$0x75316420]  ;;  %p1310_p4 = pnand %p1309_p1, %p1493_p3 }
  0x44   : > { %v343_v21 = vld.sshfl [vmem:[#allocation1 + $0x10] sm:$0xff pattern:$0x75316420]  ;;  %v344_v22 = vld.sshfl [vmem:[#allocation1 + $0x18] sm:$0xff pattern:$0x75316420]  ;;  %p1315_p9 = por %p1314_p2, %p1313_p11 }
  0x45   : > { %670 = vmatpush.bf16.msra.mxu0 %v1022_v12  ;;  %v347_v25 = vld.sshfl [vmem:[#allocation1 + $0x20] sm:$0xff pattern:$0x75316420]  ;;  %v348_v26 = vld.sshfl [vmem:[#allocation1 + $0x28] sm:$0xff pattern:$0x75316420]  ;;  %p1311_p8 = pneg %p1310_p4 }
  0x46   : > { %687 = vmatpush.bf16.msra.mxu1 %v1026_v13  ;;  %v351_v28 = vld.sshfl [vmem:[#allocation1 + $0x30] sm:$0xff pattern:$0x75316420]  ;;  %v352_v29 = vld.sshfl [vmem:[#allocation1 + $0x38] sm:$0xff pattern:$0x75316420] }
  0x47   : > { %353 = vst [vmem:[#allocation1] ss:$2 sm:$0xff] %v1040_v17  ;;  %v382_v30 = vsel %vm381_vm0, %v339_v18, 0.0  ;;  %v397_v31 = vsel %vm381_vm0, %v343_v21, 0.0  ;;  %v411_v32 = vsel %vm381_vm0, %v347_v25, 0.0  ;;  %v425_v33 = vsel %vm381_vm0, %v351_v28, 0.0  ;;  %p1316_p10 = pnand %p1315_p9, %p1311_p8 }
  0x48   : > { %356 = vst [vmem:[#allocation1 + $0x10] ss:$2 sm:$0xff] %v1041_v20  ;;  %v383_v34 = vrot.slane %v382_v30, 4  ;;  %v398_v35 = vrot.slane %v397_v31, 4  ;;  %v412_v36 = vrot.slane %v411_v32, 4  ;;  %v426_v37 = vrot.slane %v425_v33, 4 }
  0x49   : > { %671 = vmatpush.bf16.msra.mxu0 %v1021_v15  ;;  %359 = vst [vmem:[#allocation1 + $0x20] ss:$2 sm:$0xff] %v1044_v24  ;;  %v390_v38 = vsel %vm389_vm1, %v340_v19, 0.0  ;;  %v404_v39 = vsel %vm389_vm1, %v344_v22, 0.0  ;;  %v418_v40 = vsel %vm389_vm1, %v348_v26, 0.0  ;;  %v432_v49 = vsel %vm389_vm1, %v352_v29, 0.0 }
  0x4a   : > { %362 = vst [vmem:[#allocation1 + $0x30] ss:$2 sm:$0xff] %v1045_v27  ;;  %v384_v41 = vadd.f32 %v383_v34, %v382_v30  ;;  %v399_v42 = vadd.f32 %v398_v35, %v397_v31  ;;  %v413_v43 = vadd.f32 %v412_v36, %v411_v32  ;;  %v427_v44 = vadd.f32 %v426_v37, %v425_v33 }
  0x4b   : > { %v391_v46 = vrot.slane %v390_v38, 4  ;;  %v405_v47 = vrot.slane %v404_v39, 4  ;;  %v419_v48 = vrot.slane %v418_v40, 4  ;;  %v433_v56 = vrot.slane %v432_v49, 4 }
  0x4c   : > { %v385_v50 = vrot.slane %v384_v41, 2  ;;  %v400_v51 = vrot.slane %v399_v42, 2  ;;  %v414_v52 = vrot.slane %v413_v43, 2  ;;  %v428_v53 = vrot.slane %v427_v44, 2 }
  0x4d   : > { %672 = vmatpush.bf16.msra.mxu0 %v1020_v23  ;;  %v392_v54 = vadd.f32 %v391_v46, %v390_v38  ;;  %v406_v55 = vadd.f32 %v405_v47, %v404_v39  ;;  %v1557_v3 = vadd.f32 %v419_v48, %v418_v40  ;;  %v1559_v8 = vadd.f32 %v433_v56, %v432_v49  ;;  %v708_v46 = vld [vmem:[#allocation7 + $0x78] sm:$0xff]  ;;  %v707_v47 = vld [vmem:[#allocation7 + $0x70] sm:$0xff] }
  0x4e   : > { %v354_v58 = vld.sshfl [vmem:[#allocation1] sm:$0xff pattern:$0x75316420]  ;;  %v386_v59 = vadd.f32 %v385_v50, %v384_v41  ;;  %v401_v60 = vadd.f32 %v400_v51, %v399_v42  ;;  %v415_v61 = vadd.f32 %v414_v52, %v413_v43  ;;  %v429_v62 = vadd.f32 %v428_v53, %v427_v44  ;;  %v355_v52 = vld.sshfl [vmem:[#allocation1 + $0x8] sm:$0xff pattern:$0x75316420]  ;;  %709 = vmatpush.msra.mxu2 %v708_v46 }
  0x4f   : > { %v357_v63 = vld.sshfl [vmem:[#allocation1 + $0x10] sm:$0xff pattern:$0x75316420]  ;;  %v439_v0 = vsel %vm381_vm0, %v354_v58, 0.0  ;;  %v393_v1 = vrot.slane %v392_v54, 2  ;;  %v407_v2 = vrot.slane %v406_v55, 2 }
  0x50   : > { %v360_v4 = vld.sshfl [vmem:[#allocation1 + $0x20] sm:$0xff pattern:$0x75316420]  ;;  %v387_v5 = vrot.slane %v386_v59, 1  ;;  %v402_v6 = vrot.slane %v401_v60, 1  ;;  %v416_v7 = vrot.slane %v415_v61, 1  ;;  %710 = vmatpush.msra.mxu2 %v707_v47 }
  0x51   : > { %673 = vmatpush.bf16.msra.mxu0 %v1019_v45  ;;  %v363_v9 = vld.sshfl [vmem:[#allocation1 + $0x30] sm:$0xff pattern:$0x75316420]  ;;  %v430_v10 = vrot.slane %v429_v62, 1  ;;  %v440_v11 = vrot.slane %v439_v0, 4  ;;  %v453_v12 = vsel %vm381_vm0, %v357_v63, 0.0  ;;  %v394_v13 = vadd.f32 %v393_v1, %v392_v54 }
  0x52   : > { %v388_v14 = vadd.f32 %v387_v5, %v386_v59  ;;  %v403_v15 = vadd.f32 %v402_v6, %v401_v60  ;;  %v417_v16 = vadd.f32 %v416_v7, %v415_v61  ;;  %v454_v17 = vrot.slane %v453_v12, 4  ;;  %v706_v58 = vld [vmem:[#allocation7 + $0x68] sm:$0xff]  ;;  %v358_v61 = vld.sshfl [vmem:[#allocation1 + $0x18] sm:$0xff pattern:$0x75316420] }
  0x53   : > { %v431_v18 = vadd.f32 %v430_v10, %v429_v62  ;;  %v441_v19 = vadd.f32 %v440_v11, %v439_v0  ;;  %v467_v20 = vsel %vm381_vm0, %v360_v4, 0.0  ;;  %v481_v21 = vsel %vm381_vm0, %v363_v9, 0.0  ;;  %v705_v4 = vld [vmem:[#allocation7 + $0x60] sm:$0xff]  ;;  %711 = vmatpush.msra.mxu2 %v706_v58 }
  0x54   : > { %v455_v22 = vadd.f32 %v454_v17, %v453_v12  ;;  %v468_v23 = vrot.slane %v467_v20, 4  ;;  %v482_v24 = vrot.slane %v481_v21, 4  ;;  %v495_v25 = vpack.c.bf16 %v388_v14, %v388_v14  ;;  %v361_v11 = vld.sshfl [vmem:[#allocation1 + $0x28] sm:$0xff pattern:$0x75316420]  ;;  %v704_v14 = vld [vmem:[#allocation7 + $0x58] sm:$0xff] }
  0x55   : > { %674 = vmatpush.bf16.msra.mxu0 %v1018_v57  ;;  %v442_v26 = vrot.slane %v441_v19, 2  ;;  %v497_v27 = vpack.c.bf16 %v403_v15, %v403_v15  ;;  %v499_v28 = vpack.c.bf16 %v417_v16, %v417_v16  ;;  %v501_v29 = vpack.c.bf16 %v431_v18, %v431_v18  ;;  %712 = vmatpush.msra.mxu2 %v705_v4 }
  0x56   : > { %v456_v30 = vrot.slane %v455_v22, 2  ;;  %v469_v31 = vadd.f32 %v468_v23, %v467_v20  ;;  %v483_v32 = vadd.f32 %v482_v24, %v481_v21  ;;  %v551_v33 = vunpack.c.l.b16 %v495_v25  ;;  %v364_v20 = vld.sshfl [vmem:[#allocation1 + $0x38] sm:$0xff pattern:$0x75316420] }
  0x57   : > { %v443_v34 = vadd.f32 %v442_v26, %v441_v19  ;;  %v553_v35 = vunpack.c.l.b16 %v497_v27  ;;  %v555_v36 = vunpack.c.l.b16 %v499_v28  ;;  %v557_v37 = vunpack.c.l.b16 %v501_v29  ;;  %v703_v24 = vld [vmem:[#allocation7 + $0x50] sm:$0xff]  ;;  %713 = vmatpush.msra.mxu2 %v704_v14 }
  0x58   : > { %v457_v38 = vadd.f32 %v456_v30, %v455_v22  ;;  %v470_v39 = vrot.slane %v469_v31, 2  ;;  %v484_v40 = vrot.slane %v483_v32, 2  ;;  %v395_v41 = vrot.slane %v394_v13, 1 }
  0x59   : > { %v444_v42 = vrot.slane %v443_v34, 1  ;;  %v568_v43 = vsel %vm567_vm2, %v553_v35, %v551_v33  ;;  %v408_v44 = vadd.f32 %v407_v2, %v406_v55  ;;  %v421_v45 = vrot.slane %v1557_v3, 2  ;;  %714 = vmatpush.msra.mxu2 %v703_v24  ;;  %v693_v24 = vld [vmem:[#allocation7] sm:$0xff] }
  0x5a   : > { %v458_v48 = vrot.slane %v457_v38, 1  ;;  %v471_v49 = vadd.f32 %v470_v39, %v469_v31  ;;  %v485_v50 = vadd.f32 %v484_v40, %v483_v32  ;;  %v570_v51 = vsel %vm569_vm3, %v555_v36, %v568_v43  ;;  %v702_v32 = vld [vmem:[#allocation7 + $0x48] sm:$0xff] }
  0x5b   : > { %v445_v53 = vadd.f32 %v444_v42, %v443_v34  ;;  %v572_v54 = vsel %vm571_vm4, %v557_v37, %v570_v51  ;;  %v1568_v56 = vadd.f32 %v395_v41, %v394_v13  ;;  %v409_v57 = vrot.slane %v408_v44, 1  ;;  %v701_v41 = vld [vmem:[#allocation7 + $0x40] sm:$0xff]  ;;  %715 = vmatpush.msra.mxu2 %v702_v32 }
  0x5c   : > { %v459_v55 = vadd.f32 %v458_v48, %v457_v38  ;;  %v472_v59 = vrot.slane %v471_v49, 1  ;;  %v486_v60 = vrot.slane %v485_v50, 1  ;;  %v422_v62 = vadd.f32 %v421_v45, %v1557_v3  ;;  %v738_v32 = vld [vmem:[#allocation8 + $0x40] sm:$0xff] }
  0x5d   : > { %v503_v63 = vpack.c.bf16 %v445_v53, %v445_v53  ;;  %v410_v0 = vadd.f32 %v409_v57, %v408_v44  ;;  %v435_v1 = vrot.slane %v1559_v8, 2  ;;  %v446_v2 = vsel %vm389_vm1, %v355_v52, 0.0  ;;  %716 = vmatpush.msra.mxu2 %v701_v41 }
  0x5e   : > { %v473_v5 = vadd.f32 %v472_v59, %v471_v49  ;;  %v487_v6 = vadd.f32 %v486_v60, %v485_v50  ;;  %v505_v7 = vpack.c.bf16 %v459_v55, %v459_v55  ;;  %v423_v9 = vrot.slane %v422_v62, 1  ;;  %v700_v50 = vld [vmem:[#allocation7 + $0x38] sm:$0xff]  ;;  %v699_v55 = vld [vmem:[#allocation7 + $0x30] sm:$0xff] }
  0x5f   : > { %v559_v10 = vunpack.c.l.b16 %v503_v63  ;;  %v436_v12 = vadd.f32 %v435_v1, %v1559_v8  ;;  %v447_v13 = vrot.slane %v446_v2, 4  ;;  %v460_v3 = vsel %vm389_vm1, %v358_v61, 0.0  ;;  %717 = vmatpush.msra.mxu2 %v700_v50  ;;  %v698_v1 = vld [vmem:[#allocation7 + $0x28] sm:$0xff]  ;;  %v796_v50 = vld [vmem:[#allocation10 + $0x60] sm:$0xff] }
  0x60   : > { %v507_v15 = vpack.c.bf16 %v473_v5, %v473_v5  ;;  %v509_v16 = vpack.c.bf16 %v487_v6, %v487_v6  ;;  %v561_v17 = vunpack.c.l.b16 %v505_v7  ;;  %v424_v18 = vadd.f32 %v423_v9, %v422_v62  ;;  %v697_v9 = vld [vmem:[#allocation7 + $0x20] sm:$0xff] }
  0x61   : > { %v574_v19 = vsel %vm573_vm5, %v559_v10, %v572_v54  ;;  %v437_v21 = vrot.slane %v436_v12, 1  ;;  %v448_v22 = vadd.f32 %v447_v13, %v446_v2  ;;  %v461_v23 = vrot.slane %v460_v3, 4  ;;  %718 = vmatpush.msra.mxu2 %v699_v55  ;;  %v794_v55 = vld [vmem:[#allocation10 + $0x50] sm:$0xff] }
  0x62   : > { %v563_v25 = vunpack.c.l.b16 %v507_v15  ;;  %v565_v26 = vunpack.c.l.b16 %v509_v16  ;;  %v576_v8 = vsel %vm575_vm6, %v561_v17, %v574_v19  ;;  %v474_v27 = vsel %vm389_vm1, %v361_v11, 0.0  ;;  %v695_v17 = vld [vmem:[#allocation7 + $0x10] sm:$0xff] }
  0x63   : > { %v438_v28 = vadd.f32 %v437_v21, %v436_v12  ;;  %v449_v29 = vrot.slane %v448_v22, 2  ;;  %v462_v30 = vadd.f32 %v461_v23, %v460_v3  ;;  %v475_v31 = vrot.slane %v474_v27, 4  ;;  %719 = vmatpush.msra.mxu2 %v698_v1  ;;  %v696_v3 = vld [vmem:[#allocation7 + $0x18] sm:$0xff]  ;;  %v694_v23 = vld [vmem:[#allocation7 + $0x8] sm:$0xff] }
  0x64   : > { %v578_v33 = vsel %vm577_vm7, %v563_v25, %v576_v8  ;;  %v488_v34 = vsel %vm389_vm1, %v364_v20, 0.0  ;;  %v496_v35 = vpack.c.bf16 %v1568_v56, %v1568_v56  ;;  %v498_v36 = vpack.c.bf16 %v410_v0, %v410_v0  ;;  %v745_v25 = vld [vmem:[#allocation8 + $0x78] sm:$0xff]  ;;  %v743_v8 = vld [vmem:[#allocation8 + $0x68] sm:$0xff] }
  0x65   : > { %v580_v37 = vsel %vm579_vm8, %v565_v26, %v578_v33  ;;  %v450_v38 = vadd.f32 %v449_v29, %v448_v22  ;;  %v463_v39 = vrot.slane %v462_v30, 2  ;;  %v476_v40 = vadd.f32 %v475_v31, %v474_v27  ;;  %720 = vmatpush.msra.mxu2 %v697_v9  ;;  %v744_v26 = vld [vmem:[#allocation8 + $0x70] sm:$0xff]  ;;  %746 = vmatpush.msra.mxu3 %v745_v25  ;;  %v742_v27 = vld [vmem:[#allocation8 + $0x60] sm:$0xff]  ;;  %v739_v31 = vld [vmem:[#allocation8 + $0x48] sm:$0xff] }
  0x66   : > { %v588_v42 = vpack.c.b16 %v580_v37, %v580_v37  ;;  %v489_v43 = vrot.slane %v488_v34, 4  ;;  %v500_v44 = vpack.c.bf16 %v424_v18, %v424_v18  ;;  %v502_v45 = vpack.c.bf16 %v438_v28, %v438_v28  ;;  %v741_v28 = vld [vmem:[#allocation8 + $0x58] sm:$0xff]  ;;  %v734_v37 = vld [vmem:[#allocation8 + $0x20] sm:$0xff] }
  0x67   : > { %v451_v46 = vrot.slane %v450_v38, 1  ;;  %v464_v47 = vadd.f32 %v463_v39, %v462_v30  ;;  %v477_v48 = vrot.slane %v476_v40, 2  ;;  %v552_v49 = vunpack.c.l.b16 %v496_v35  ;;  %721 = vmatpush.msra.mxu2 %v696_v3  ;;  %747 = vmatpush.msra.mxu3 %v744_v26  ;;  %v740_v30 = vld [vmem:[#allocation8 + $0x50] sm:$0xff]  ;;  %v737_v33 = vld [vmem:[#allocation8 + $0x38] sm:$0xff] }
  0x68   : > { %675 = vmatmul.bf16.vlgmr.msra.gmra.mxu0 %v588_v42  ;;  %v490_v51 = vadd.f32 %v489_v43, %v488_v34  ;;  %v554_v52 = vunpack.c.l.b16 %v498_v36  ;;  %v556_v53 = vunpack.c.l.b16 %v500_v44  ;;  %v558_v54 = vunpack.c.l.b16 %v502_v45  ;;  %v736_v35 = vld [vmem:[#allocation8 + $0x30] sm:$0xff]  ;;  %v735_v36 = vld [vmem:[#allocation8 + $0x28] sm:$0xff]  ;;  %v730_v44 = vld [vmem:[#allocation8] sm:$0xff] }
  0x69   : > { %v452_v56 = vadd.f32 %v451_v46, %v450_v38  ;;  %v465_v57 = vrot.slane %v464_v47, 1  ;;  %v478_v58 = vadd.f32 %v477_v48, %v476_v40  ;;  %722 = vmatpush.msra.mxu2 %v695_v17  ;;  %748 = vmatpush.msra.mxu3 %v743_v8  ;;  %v733_v38 = vld [vmem:[#allocation8 + $0x18] sm:$0xff]  ;;  %v732_v40 = vld [vmem:[#allocation8 + $0x10] sm:$0xff]  ;;  %v731_v43 = vld [vmem:[#allocation8 + $0x8] sm:$0xff] }
  0x6a   : > { %v491_v59 = vrot.slane %v490_v51, 2  ;;  %v581_v60 = vsel %vm567_vm2, %v554_v52, %v552_v49  ;;  %v798_v48 = vld [vmem:[#allocation10 + $0x70] sm:$0xff]  ;;  %v797_v49 = vld [vmem:[#allocation10 + $0x68] sm:$0xff]  ;;  %v787_v1 = vld [vmem:[#allocation10 + $0x18] sm:$0xff] }
  0x6b   : > { %v466_v61 = vadd.f32 %v465_v57, %v464_v47  ;;  %v479_v62 = vrot.slane %v478_v58, 1  ;;  %v504_v63 = vpack.c.bf16 %v452_v56, %v452_v56  ;;  %v582_v0 = vsel %vm569_vm3, %v556_v53, %v581_v60  ;;  %723 = vmatpush.msra.mxu2 %v694_v23  ;;  %749 = vmatpush.msra.mxu3 %v742_v27  ;;  %v799_v47 = vld [vmem:[#allocation10 + $0x78] sm:$0xff]  ;;  %v792_v60 = vld [vmem:[#allocation10 + $0x40] sm:$0xff] }
  0x6c   : > { %v492_v2 = vadd.f32 %v491_v59, %v490_v51  ;;  %v583_v4 = vsel %vm571_vm4, %v558_v54, %v582_v0  ;;  %800 = vmatpush.msrb.mxu1 %v799_v47  ;;  %v795_v51 = vld [vmem:[#allocation10 + $0x58] sm:$0xff]  ;;  %v793_v59 = vld [vmem:[#allocation10 + $0x48] sm:$0xff]  ;;  %v788_v0 = vld [vmem:[#allocation10 + $0x20] sm:$0xff] }
  0x6d   : > { %v480_v5 = vadd.f32 %v479_v62, %v478_v58  ;;  %v506_v6 = vpack.c.bf16 %v466_v61, %v466_v61  ;;  %v560_v7 = vunpack.c.l.b16 %v504_v63  ;;  %724 = vmatpush.msra.mxu2 %v693_v24  ;;  %750 = vmatpush.msra.mxu3 %v741_v28  ;;  %v791_v61 = vld [vmem:[#allocation10 + $0x38] sm:$0xff]  ;;  %v790_v62 = vld [vmem:[#allocation10 + $0x30] sm:$0xff]  ;;  %v789_v63 = vld [vmem:[#allocation10 + $0x28] sm:$0xff] }
  0x6e   : > { %v493_v10 = vrot.slane %v492_v2, 1  ;;  %801 = vmatpush.msrb.mxu1 %v798_v48 }
  0x6f   : > { %v508_v11 = vpack.c.bf16 %v480_v5, %v480_v5  ;;  %v562_v12 = vunpack.c.l.b16 %v506_v6  ;;  %v584_v13 = vsel %vm573_vm5, %v560_v7, %v583_v4  ;;  %751 = vmatpush.msra.mxu3 %v740_v30  ;;  %v785_v4 = vld [vmem:[#allocation10 + $0x8] sm:$0xff]  ;;  %v784_v5 = vld [vmem:[#allocation10] sm:$0xff] }
  0x70   : > { %v494_v14 = vadd.f32 %v493_v10, %v492_v2  ;;  %802 = vmatpush.msrb.mxu1 %v797_v49  ;;  %v786_v2 = vld [vmem:[#allocation10 + $0x10] sm:$0xff] }
  0x71   : > { %v564_v15 = vunpack.c.l.b16 %v508_v11  ;;  %v585_v16 = vsel %vm575_vm6, %v562_v12, %v584_v13  ;;  %752 = vmatpush.msra.mxu3 %v739_v31 }
  0x72   : > { %v510_v18 = vpack.c.bf16 %v494_v14, %v494_v14  ;;  %803 = vmatpush.msrb.mxu1 %v796_v50 }
  0x73   : > { %v586_v19 = vsel %vm577_vm7, %v564_v15, %v585_v16  ;;  %753 = vmatpush.msra.mxu3 %v738_v32 }
  0x74   : > { %v566_v20 = vunpack.c.l.b16 %v510_v18  ;;  %804 = vmatpush.msrb.mxu1 %v795_v51 }
  0x75   : > { %754 = vmatpush.msra.mxu3 %v737_v33 }
  0x76   : > { %v587_v21 = vsel %vm579_vm8, %v566_v20, %v586_v19  ;;  %805 = vmatpush.msrb.mxu1 %v794_v55 }
  0x77   : > { %v589_v22 = vpack.c.b16 %v587_v21, %v587_v21  ;;  %755 = vmatpush.msra.mxu3 %v736_v35 }
  0x78   : > { %806 = vmatpush.msrb.mxu1 %v793_v59 }
  0x79   : > { %1011 = vmatmul.msk.bf16.vlgmr.msra.gmra.mxu1 %vm663_vm9, %v589_v22  ;;  %756 = vmatpush.msra.mxu3 %v735_v36 }
  0x7a   : > { %807 = vmatpush.msrb.mxu1 %v792_v60 }
  0x7b   : > { %757 = vmatpush.msra.mxu3 %v734_v37 }
  0x7c   : > { %808 = vmatpush.msrb.mxu1 %v791_v61 }
  0x7d   : > { %758 = vmatpush.msra.mxu3 %v733_v38 }
  0x7e   : > { %809 = vmatpush.msrb.mxu1 %v790_v62 }
  0x7f   : > { %759 = vmatpush.msra.mxu3 %v732_v40 }
  0x80   : > { %810 = vmatpush.msrb.mxu1 %v789_v63 }
  0x81   : > { %760 = vmatpush.msra.mxu3 %v731_v43 }
  0x82   : > { %811 = vmatpush.msrb.mxu1 %v788_v0 }
  0x83   : > { %761 = vmatpush.msra.mxu3 %v730_v44 }
  0x84   : > { %812 = vmatpush.msrb.mxu1 %v787_v1 }
  0x86   : > { %813 = vmatpush.msrb.mxu1 %v786_v2 }
  0x88   : > { %814 = vmatpush.msrb.mxu1 %v785_v4 }
  0x8a   : > { %815 = vmatpush.msrb.mxu1 %v784_v5 }
  0xe5   : > { %v676_v29 = vpop.f32.mrf.mxu0 }
  0xed   : > { %v678_v34 = vpop.f32.mrf.mxu0 }
  0xf6   : > { %v689_v39 = vpop.f32.mrf.mxu1 }
  0xf7   : > { %v690_v41 = vadd.f32 %v689_v39, %v676_v29 }
  0xf9   : > { %725 = vmatmul.f32.vlgmr.msra.gmra.mxu2 %v690_v41 }
  0xfe   : > { %v691_v42 = vpop.f32.mrf.mxu1 }
 0x17c   : > { %v726_v45 = vpop.f32.mrf.mxu2 }
 0x17d   : > { %v729_v46 = vmax.f32 %v726_v45, 0.0 }
 0x17f   : > { %762 = vmatmul.f32.vlgmr.msra.gmra.mxu3 %v729_v46 }
 0x202   : > { %v763_v52 = vpop.f32.mrf.mxu3 }
 0x203   : > { %v766_v53 = vmax.f32 %v763_v52, 0.0 }
 0x205   : > { %v767_v54 = vsub.f32 %v766_v53, %v690_v41 }
 0x207   : > { %v768_v56 = vmul.f32 0.2, %v767_v54 }
 0x209   : > { %v769_v57 = vadd.f32 %v768_v56, %v690_v41 }
 0x20b   : > { %v770_v58 = vmul.f32 %v769_v57, %v769_v57 }
 0x20d   : > { %771 = vadd.xlane.f32.xlu0 %v770_v58 }
 0x280   : > { %v772_v6 = vpop.xlane.xlu0 %771 }
 0x281   : > { %1140 = vrsqrt.f32 %v772_v6  ;;  %vm779_vm11 = vweird.f32 %v772_v6 }
 0x287   : > { %v1141_v7 = vpop.eup %1140 }
 0x288   : > { %v774_v9 = vmul.f32 %v1141_v7, %v772_v6  ;;  %vm780_vm10 = vweird.f32 %v1141_v7 }
 0x289   : > { %vm781_vm12 = vmor %vm779_vm11, %vm780_vm10 }
 0x28a   : > { %v775_v10 = vmul.f32 %v1141_v7, %v774_v9 }
 0x28c   : > { %v776_v11 = vmul.f32 0.5, %v775_v10 }
 0x28e   : > { %v777_v12 = vsub.f32 1.5, %v776_v11 }
 0x290   : > { %v778_v13 = vmul.f32 %v1141_v7, %v777_v12 }
 0x292   : > { %v782_v3 = vsel %vm781_vm12, %v1141_v7, %v778_v13 }
 0x293   : > { %v783_v14 = vmul.f32 %v782_v3, %v769_v57 }
 0x295   : > { %816 = vmatmul.f32.vlgmr.msrb.gmra.mxu1 %v783_v14 }
 0x312   : > { %v817_v15 = vpop.f32.mrf.mxu1 }
 0x313   : > { %820 = vst [vmem:[%s311_s13] sm:$0xff] %v817_v15 }
 0x314   : > { %1319 = shalt.err (!%p1316_p10)
}
 0x315   : > { %1067 = dma.vmem_to_hbm [thread:$0]  (%p1493_p3), %s835_s14, 128, %s837_s7, %s822_s26  }
 0x316 PF: > { %s848_s6 = sand.u32 1, %s1354_s18   ;;  %p1638_p12 = scmp.ge.s32.totalorder %s1366_s21, 2 }
 0x317   : > { %s849_s24 = scalar_lea.sflag [#allocation4], %s848_s6 }
 0x318   : > { %p1087_p13 = pnand %p1638_p12, %p1441_p6 }
 0x31a   : > { %p1088_p0 = pneg %p1087_p13 }
 0x31c   : > { %1349 = dma.done.wait (%p1088_p0), %s849_s24, 128  }
 0x31d   : > { %1351 = vsyncadd (%p1088_p0), %s849_s24, 4294967168  ;;  %p20_p5 = scmp.ge.s32.totalorder %s1483_s10, 4   ;;  %s1639_s18 = smov %s1358_s19 }
 0x31e   : > { %s1640_s19 = smov %s1362_s20  ;;  %s1641_s20 = smov %s1499_s17 }
 0x31f   : > { %s1642_s21 = smov %s1483_s10  ;;  %22 = sbr.rel (!%p20_p5) target bundleno = 7 (0x7), region = 104 }
 0x324   :  { %855 = vsyncpa [#allocation3], 1 }
 0x325   :  { %857 = vsyncpa [#allocation3 + $0x1], 1 }
 0x326   :  { %858 = vsyncpa [#allocation6], 1 }
 0x327   :  { %859 = vsyncpa [#allocation9], 1 }
 0x328   :  { %860 = vsyncpa [#allocation4], 1 }
 0x329   :  { %862 = vsyncpa [#allocation4 + $0x1], 1 }

</bundles_post_ra>
